<compile_context>
chip_gen: v6e
topology: v6e:2x2x1
jax: 0.10.0
libtpu: 0.0.40
codegen_flags: <defaults>
</compile_context>

<pallas_src>
import functools

import jax
import jax.numpy as jnp
from jax.experimental import pallas as pl
from jax.experimental.pallas import tpu as pltpu

EPS = 1e-5
LANE = 128


def _round_up(x, m):
    return ((x + m - 1) // m) * m


def _emit_partials(p1, lab, out_ref, *, total_rows, block_rows, ragged):
    # p1  : (TR, LANE) f32 class-1 probability
    # lab : (TR, LANE) integer labels (native dtype)
    # out_ref block: (1, 3, LANE) f32 rows = [num, den1, den2] lane-partials
    t_cond = lab == 1                      # (lab==1) implies (lab>0)
    v_cond = lab > 0
    if ragged:
        # Last block over-reads past the array; those rows hold garbage
        # (labels AND logits).  Mask by row index with selects so any NaN in
        # the garbage logits can never reach a multiply/sum.
        row = jax.lax.broadcasted_iota(jnp.int32, lab.shape, 0)
        in_bounds = row < (total_rows - pl.program_id(0) * block_rows)
        t_cond = jnp.logical_and(t_cond, in_bounds)
        v_cond = jnp.logical_and(v_cond, in_bounds)

    zero = jnp.zeros_like(p1)
    num_v = jnp.sum(jnp.where(t_cond, p1, zero), axis=0, keepdims=True)   # (1, LANE)
    o = jnp.where(v_cond, p1, zero)
    den1_v = jnp.sum(o * o, axis=0, keepdims=True)                        # (1, LANE)
    den2_v = jnp.sum(jnp.where(t_cond, 1.0, 0.0), axis=0, keepdims=True)  # (1, LANE)

    # Three direct row stores (no sublane concat).
    out_ref[0, 0:1, :] = num_v
    out_ref[0, 1:2, :] = den1_v
    out_ref[0, 2:3, :] = den2_v


def _dice_partials_c2(logit_ref, labels_ref, out_ref, *, total_rows, block_rows, ragged):
    # logit_ref: (2, TR, LANE) any float dtype, labels_ref: (TR, LANE) int
    l0 = logit_ref[0].astype(jnp.float32)
    l1 = logit_ref[1].astype(jnp.float32)
    # softmax over 2 classes -> class-1 prob == sigmoid(l1 - l0); EUP recip.
    p1 = pl.reciprocal(1.0 + jnp.exp(l0 - l1), approx=True)
    _emit_partials(p1, labels_ref[...], out_ref,
                   total_rows=total_rows, block_rows=block_rows, ragged=ragged)


def _dice_partials_c1(logit_ref, labels_ref, out_ref, *, total_rows, block_rows, ragged):
    # logit_ref: (TR, LANE), labels_ref: (TR, LANE)
    l = logit_ref[...].astype(jnp.float32)
    p1 = pl.reciprocal(1.0 + jnp.exp(-l), approx=True)    # sigmoid
    _emit_partials(p1, labels_ref[...], out_ref,
                   total_rows=total_rows, block_rows=block_rows, ragged=ragged)


def otl_dice_loss(logit, labels, *, tile_rows=4096):
    """logit: (1, C, D, H, W) float (f32/bf16), C in {1, 2}; labels: (D, H, W) int."""
    n, c = logit.shape[0], logit.shape[1]
    assert n == 1 and c <= 2
    s = 1
    for d in labels.shape:
        s *= d

    # Row count, (8,128)-aligned so every BlockSpec row tile is legal.
    rows = _round_up(pl.cdiv(s, LANE), 8)
    s_pad = rows * LANE

    lab_flat = labels.reshape(-1)                     # free (contiguous)
    logit_flat = logit.reshape(c, -1)                 # free (contiguous)
    if s_pad != s:
        # Tiny tail pad (< 8*128 elements) only for non-aligned volumes.
        # Padded labels are 0 -> validmask 0 -> contribute nothing.
        # TODO(synk): for large non-aligned volumes, jit together with the
        # logit producer so XLA fuses this pad into the producer's write.
        lab_flat = jnp.pad(lab_flat, (0, s_pad - s))
        logit_flat = jnp.pad(logit_flat, ((0, 0), (0, s_pad - s)))
    labels2 = lab_flat.reshape(rows, LANE)

    # Tile selection: multiple of 8 rows, capped at tile_rows, and >= 2 blocks
    # whenever the volume allows it (keeps both v7x TensorCores busy via the
    # "parallel" grid axis).
    max_tr = max(8, _round_up(min(tile_rows, rows), 8))
    num_blocks = pl.cdiv(rows, max_tr)
    if num_blocks == 1 and rows >= 16:
        num_blocks = 2
    tr = _round_up(pl.cdiv(rows, num_blocks), 8)
    num_blocks = pl.cdiv(rows, tr)
    ragged = (rows % tr) != 0                         # last block over-reads -> mask in-kernel

    labels_spec = pl.BlockSpec((tr, LANE), lambda i: (i, 0))
    out_spec = pl.BlockSpec((1, 3, LANE), lambda i: (i, 0, 0))
    out_shape = jax.ShapeDtypeStruct((num_blocks, 3, LANE), jnp.float32)

    if c == 2:
        logit2 = logit_flat.reshape(2, rows, LANE)
        kernel = functools.partial(_dice_partials_c2,
                                   total_rows=rows, block_rows=tr, ragged=ragged)
        logit_spec = pl.BlockSpec((2, tr, LANE), lambda i: (0, i, 0))
    else:
        logit2 = logit_flat.reshape(rows, LANE)
        kernel = functools.partial(_dice_partials_c1,
                                   total_rows=rows, block_rows=tr, ragged=ragged)
        logit_spec = pl.BlockSpec((tr, LANE), lambda i: (i, 0))

    # Raise the scoped-VMEM limit if a user-chosen large tile needs it
    # (double-buffered logits + labels per block, plus slack).
    per_block = tr * LANE * (c * jnp.dtype(logit.dtype).itemsize
                             + jnp.dtype(labels.dtype).itemsize)
    vmem_limit = int(min(64 << 20, max(32 << 20, 2 * per_block + (4 << 20))))

    partials = pl.pallas_call(
        kernel,
        out_shape=out_shape,
        grid_spec=pltpu.PrefetchScalarGridSpec(
            num_scalar_prefetch=0,
            grid=(num_blocks,),
            in_specs=[logit_spec, labels_spec],
            out_specs=out_spec,
        ),
        compiler_params=pltpu.CompilerParams(
            dimension_semantics=("parallel",),
            vmem_limit_bytes=vmem_limit),
    )(logit2, labels2)

    # Tiny final combine (num_blocks x 3 x 128 floats) in plain JAX.
    sums = jnp.sum(partials, axis=(0, 2))             # (3,)
    num, den1, den2 = sums[0], sums[1], sums[2]
    dice = 2.0 * ((num + EPS) / (den1 + den2 + EPS))
    # loss = -sum(dice) / labels.size(0); after unsqueeze_(0), size(0) == 1.
    return -dice


def _ref_loss(logit, labels):
    """Pure-JAX reference mirroring the PyTorch forward exactly."""
    c = logit.shape[1]
    if c == 1:
        outs = jax.nn.sigmoid(logit)
    else:
        outs = jax.nn.softmax(logit, axis=1)[:, 1:]
    lab = labels[None]                                 # unsqueeze_(0)
    label_t = (lab == 1).astype(jnp.float32)
    validmask = (lab > 0).astype(jnp.float32)
    o = jnp.squeeze(outs * validmask, 1)
    t = label_t * validmask
    num = jnp.sum(o * t)
    den1 = jnp.sum(o * o)
    den2 = jnp.sum(t * t)
    dice = 2.0 * ((num + EPS) / (den1 + den2 + EPS))
    return -dice / 1.0                                 # / labels.size(0) == 1


if __name__ == "__main__":
    key = jax.random.PRNGKey(0)
    # approx reciprocal + EUP exp -> ~1e-4-level relative error vs exact ref.
    RTOL = ATOL = 2e-3

    # Case 1: C=2, aligned volume (no pad), default tile -> 2 "parallel" blocks.
    k1, k2, key = jax.random.split(key, 3)
    D, H, W = 16, 32, 32
    logit = jax.random.normal(k1, (1, 2, D, H, W), dtype=jnp.float32)
    labels = jax.random.randint(k2, (D, H, W), 0, 3, dtype=jnp.int32)
    loss = otl_dice_loss(logit, labels)
    jax.block_until_ready(loss)
    ref = _ref_loss(logit, labels)
    assert jnp.allclose(loss, ref, rtol=RTOL, atol=ATOL), (float(loss), float(ref))

    # Case 2: same data, small tile -> 6 blocks with a ragged last block
    # (exercises the in-kernel broadcasted_iota row mask, no wrapper padding).
    loss = otl_dice_loss(logit, labels, tile_rows=24)
    jax.block_until_ready(loss)
    assert jnp.allclose(loss, ref, rtol=RTOL, atol=ATOL), (float(loss), float(ref))

    # Case 3: C=2, small aligned volume, default tile -> 2 small blocks.
    k1, k2, key = jax.random.split(key, 3)
    D, H, W = 8, 16, 16
    logit = jax.random.normal(k1, (1, 2, D, H, W), dtype=jnp.float32)
    labels = jax.random.randint(k2, (D, H, W), 0, 3, dtype=jnp.int32)
    loss = otl_dice_loss(logit, labels)
    jax.block_until_ready(loss)
    ref = _ref_loss(logit, labels)
    assert jnp.allclose(loss, ref, rtol=RTOL, atol=ATOL), (float(loss), float(ref))

    # Case 4: C=1 (sigmoid path), non-aligned volume -> tiny tail pad only.
    k1, k2, key = jax.random.split(key, 3)
    D, H, W = 7, 9, 13
    logit = jax.random.normal(k1, (1, 1, D, H, W), dtype=jnp.float32)
    labels = jax.random.randint(k2, (D, H, W), 0, 3, dtype=jnp.int32)
    loss = otl_dice_loss(logit, labels)
    jax.block_until_ready(loss)
    ref = _ref_loss(logit, labels)
    assert jnp.allclose(loss, ref, rtol=RTOL, atol=ATOL), (float(loss), float(ref))

    # Case 5: C=2 with bf16 logits accepted directly (upcast in-kernel).
    k1, k2, key = jax.random.split(key, 3)
    D, H, W = 8, 16, 16
    logit = jax.random.normal(k1, (1, 2, D, H, W), dtype=jnp.float32)
    logit_bf16 = logit.astype(jnp.bfloat16)
    labels = jax.random.randint(k2, (D, H, W), 0, 3, dtype=jnp.int32)
    loss = otl_dice_loss(logit_bf16, labels)
    jax.block_until_ready(loss)
    ref = _ref_loss(logit_bf16.astype(jnp.float32), labels)
    assert jnp.allclose(loss, ref, rtol=RTOL, atol=ATOL), (float(loss), float(ref))

    print("KERNEL_OK")
</pallas_src>

<mosaic_0001>
module attributes {stable_mosaic.version = 11 : i64} {
  func.func @_dice_partials_c2(%arg0: i32, %arg1: memref<2x64x128xf32, #tpu.memory_space<vmem>>, %arg2: memref<64x128xi32, #tpu.memory_space<vmem>>, %arg3: memref<1x3x128xf32, #tpu.memory_space<vmem>>) attributes {dimension_semantics = [#tpu.dimension_semantics<parallel>], iteration_bounds = array<i64: 2>, scalar_prefetch = 0 : i64, scratch_operands = 0 : i64, tpu.core_type = #tpu.core_type<tc>, window_params = [{transform_indices = @transform_0, window_bounds = array<i64: 2, 64, 128>}, {transform_indices = @transform_1, window_bounds = array<i64: 64, 128>}, {transform_indices = @transform_2, window_bounds = array<i64: 1, 3, 128>}]} {
    %c0 = arith.constant 0 : index
    %c0_0 = arith.constant 0 : index
    %c0_1 = arith.constant 0 : index
    %0 = vector.load %arg1[%c0, %c0_0, %c0_1] : memref<2x64x128xf32, #tpu.memory_space<vmem>>, vector<1x64x128xf32>
    %1 = vector.shape_cast %0 : vector<1x64x128xf32> to vector<64x128xf32>
    %c1 = arith.constant 1 : index
    %c0_2 = arith.constant 0 : index
    %c0_3 = arith.constant 0 : index
    %2 = vector.load %arg1[%c1, %c0_2, %c0_3] : memref<2x64x128xf32, #tpu.memory_space<vmem>>, vector<1x64x128xf32>
    %3 = vector.shape_cast %2 : vector<1x64x128xf32> to vector<64x128xf32>
    %4 = arith.subf %1, %3 : vector<64x128xf32>
    %5 = math.exp %4 : vector<64x128xf32>
    %cst = arith.constant 1.000000e+00 : f32
    %6 = vector.broadcast %cst : f32 to vector<64x128xf32>
    %7 = arith.addf %6, %5 : vector<64x128xf32>
    %8 = tpu.reciprocal %7 {approx = true} : vector<64x128xf32> -> vector<64x128xf32>
    %c0_4 = arith.constant 0 : index
    %c0_5 = arith.constant 0 : index
    %9 = vector.load %arg2[%c0_4, %c0_5] : memref<64x128xi32, #tpu.memory_space<vmem>>, vector<64x128xi32>
    %c1_i32 = arith.constant 1 : i32
    %10 = vector.broadcast %c1_i32 : i32 to vector<64x128xi32>
    %11 = arith.cmpi eq, %9, %10 : vector<64x128xi32>
    %c0_i32 = arith.constant 0 : i32
    %12 = vector.broadcast %c0_i32 : i32 to vector<64x128xi32>
    %13 = arith.cmpi sgt, %9, %12 : vector<64x128xi32>
    %cst_6 = arith.constant 0.000000e+00 : f32
    %14 = vector.broadcast %cst_6 : f32 to vector<64x128xf32>
    %15 = arith.select %11, %8, %14 : vector<64x128xi1>, vector<64x128xf32>
    %cst_7 = arith.constant dense<0.000000e+00> : vector<128xf32>
    %16 = vector.multi_reduction <add>, %15, %cst_7 [0] : vector<64x128xf32> to vector<128xf32>
    %17 = vector.shape_cast %16 : vector<128xf32> to vector<1x128xf32>
    %18 = arith.select %13, %8, %14 : vector<64x128xi1>, vector<64x128xf32>
    %19 = arith.mulf %18, %18 : vector<64x128xf32>
    %cst_8 = arith.constant dense<0.000000e+00> : vector<128xf32>
    %20 = vector.multi_reduction <add>, %19, %cst_8 [0] : vector<64x128xf32> to vector<128xf32>
    %21 = vector.shape_cast %20 : vector<128xf32> to vector<1x128xf32>
    %cst_9 = arith.constant 1.000000e+00 : f32
    %cst_10 = arith.constant 0.000000e+00 : f32
    %22 = vector.broadcast %cst_9 : f32 to vector<64x128xf32>
    %23 = vector.broadcast %cst_10 : f32 to vector<64x128xf32>
    %24 = arith.select %11, %22, %23 : vector<64x128xi1>, vector<64x128xf32>
    %cst_11 = arith.constant dense<0.000000e+00> : vector<128xf32>
    %25 = vector.multi_reduction <add>, %24, %cst_11 [0] : vector<64x128xf32> to vector<128xf32>
    %26 = vector.shape_cast %25 : vector<128xf32> to vector<1x128xf32>
    %c0_12 = arith.constant 0 : index
    %c0_13 = arith.constant 0 : index
    %c0_14 = arith.constant 0 : index
    %27 = vector.load %arg3[%c0_12, %c0_13, %c0_14] : memref<1x3x128xf32, #tpu.memory_space<vmem>>, vector<1x1x128xf32>
    %28 = vector.shape_cast %27 : vector<1x1x128xf32> to vector<1x128xf32>
    %29 = vector.shape_cast %17 : vector<1x128xf32> to vector<1x1x128xf32>
    tpu.vector_store %arg3[%c0_12, %c0_13, %c0_14], %29 {strides = array<i32>} : memref<1x3x128xf32, #tpu.memory_space<vmem>>, vector<1x1x128xf32>,
    %c0_15 = arith.constant 0 : index
    %c1_16 = arith.constant 1 : index
    %c0_17 = arith.constant 0 : index
    %30 = vector.load %arg3[%c0_15, %c1_16, %c0_17] : memref<1x3x128xf32, #tpu.memory_space<vmem>>, vector<1x1x128xf32>
    %31 = vector.shape_cast %30 : vector<1x1x128xf32> to vector<1x128xf32>
    %32 = vector.shape_cast %21 : vector<1x128xf32> to vector<1x1x128xf32>
    tpu.vector_store %arg3[%c0_15, %c1_16, %c0_17], %32 {strides = array<i32>} : memref<1x3x128xf32, #tpu.memory_space<vmem>>, vector<1x1x128xf32>,
    %c0_18 = arith.constant 0 : index
    %c2 = arith.constant 2 : index
    %c0_19 = arith.constant 0 : index
    %33 = vector.load %arg3[%c0_18, %c2, %c0_19] : memref<1x3x128xf32, #tpu.memory_space<vmem>>, vector<1x1x128xf32>
    %34 = vector.shape_cast %33 : vector<1x1x128xf32> to vector<1x128xf32>
    %35 = vector.shape_cast %26 : vector<1x128xf32> to vector<1x1x128xf32>
    tpu.vector_store %arg3[%c0_18, %c2, %c0_19], %35 {strides = array<i32>} : memref<1x3x128xf32, #tpu.memory_space<vmem>>, vector<1x1x128xf32>,
    return
  }
  func.func @transform_0(%arg0: i32) -> (i32, i32, i32) {
    %c0_i32 = arith.constant 0 : i32
    %c0_i32_0 = arith.constant 0 : i32
    %c0_i32_1 = arith.constant 0 : i32
    return %c0_i32, %arg0, %c0_i32_0 : i32, i32, i32
  }
  func.func @transform_1(%arg0: i32) -> (i32, i32) {
    %c0_i32 = arith.constant 0 : i32
    %c0_i32_0 = arith.constant 0 : i32
    return %arg0, %c0_i32 : i32, i32
  }
  func.func @transform_2(%arg0: i32) -> (i32, i32, i32) {
    %c0_i32 = arith.constant 0 : i32
    %c0_i32_0 = arith.constant 0 : i32
    %c0_i32_1 = arith.constant 0 : i32
    return %arg0, %c0_i32, %c0_i32_0 : i32, i32, i32
  }
}

</mosaic_0001>

<bundles_post_ra>
// kernel: tpu_custom_call.1
= control target key start
LH: loop header
LB: loop body
LE: loop exit
PB: predicated region body
PF: predicated region fallthrough
CT: control target
= control target key end

     0   :  { %7 = vsyncpa [#allocation3], 0  ;;  %s888_s0 = inlined_call_operand.hbm [shape: f32[2,128,128], index: 0, kind: input, shape index: {}]   ;;  %s889_s1 = inlined_call_operand.hbm [shape: s32[128,128], index: 1, kind: input, shape index: {}]   ;;  %s890_s2 = inlined_call_operand.vmem [shape: f32[2,3,128], index: 2, kind: output, shape index: {}]  }
   0x1   :  { %9 = vsyncpa [#allocation3 + $0x1], 0 }
   0x2   :  { %10 = vsyncpa [#allocation5], 0 }
   0x3   :  { %12 = vsyncpa [#allocation5 + $0x1], 0  ;;  %s672_s9 = smov 0   ;;  %s674_s10 = smov 0  }
   0x4   :  { %s676_s11 = smov 0   ;;  %s678_s12 = smov 0  }
   0x5 LB: > { %s691_s13 = sadd.s32 4294967295, %s646_s12   ;;  %s694_s14 = sadd.s32 1, %s646_s12   ;;  %s646_s12 = sphi %s678_s12, %s896_s12   ;;  %s642_s11 = sphi %s676_s11, %s895_s11   ;;  %s638_s10 = sphi %s674_s10, %s894_s10   ;;  %s634_s9 = sphi %s672_s9, %s893_s9  }
   0x6   : > { %s22_s15 = ssub.s32 %s646_s12, %s694_s14  ;;  %s25_s16 = sadd.s32 1, %s642_s11 }
   0x7   : > { %p23_p0 = scmp.eq.s32.totalorder %s22_s15, 0  ;;  %p32_p1 = scmp.ne.s32.totalorder %s642_s11, %s638_s10 }
   0x8   : > { %p33_p2 = scmp.eq.s32.totalorder %s646_s12, 0  ;;  %p38_p3 = scmp.ne.s32.totalorder %s638_s10, %s634_s9 }
   0x9   : > { %s704_s17 = scalar_select %p23_p0, %s642_s11, %s25_s16  }
   0xa   : > { %p706_p4 = por %p33_p2, %p32_p1  ;;  %p39_p5 = scmp.eq.s32.totalorder %s691_s13, 0 }
   0xb   : > { %p474_p7 = scmp.ge.s32.totalorder %s646_s12, 2 }
   0xc   : > { %p711_p6 = por %p39_p5, %p38_p3 }
   0xd   : > { %110 = sbr.rel (%p474_p7) target bundleno = 55 (0x37), region = 16 }
  0x12   : > { %s717_s20 = sand.u32 1, %s642_s11   ;;  %s497_s22 = sshll.u32 %s646_s12, 10 }
  0x13   : > { %s475_s21 = sshll.u32 %s717_s20, 7  ;;  %s124_s26 = scalar_lea.hbm %s888_s0, %s497_s22 }
  0x14   : > { %s499_s23 = scalar_select %p706_p4, [#allocation0], [#allocation8] }
  0x15   : > { %s118_s28 = scalar_lea.vmem [#allocation2], %s475_s21  ;;  %s648_s30 = smov 2048  }
  0x16   : > { %s129_s27 = sld [smem:[%s499_s23]]   ;;  %s137_s29 = sshll.u32 %s118_s28, 4  ;;  %s138_s29 = int_to_ptr.vmem [resolvable:$true] %s137_s29 }
  0x17   : > { %500 = sst [smem:[#allocation7]] (%p706_p4), %s648_s30  ;;  %s649_s3 = smov 1024  }
  0x18   : > { %501 = sst [smem:[#allocation7 + $0x1]] (%p706_p4), %s649_s3  ;;  %s650_s4 = smov 8  }
  0x19   : > { %502 = sst [smem:[#allocation7 + $0x2]] (%p706_p4), %s650_s4  ;;  %s651_s5 = smov 128  }
  0x1a   : > { %503 = sst [smem:[#allocation7 + $0x3]] (%p706_p4), %s651_s5  ;;  %s115_s8 = scalar_lea.sflag [#allocation3], %s717_s20 }
  0x1b   : > { %504 = sst [smem:[#allocation7 + $0x4]] (%p706_p4), %s651_s5  ;;  %s652_s9 = smov 131072  }
  0x1c   : > { %s478_s6 = sshll.u32 %s129_s27, 26  ;;  %505 = sst [smem:[#allocation7 + $0x5]] (%p706_p4), %s650_s4 }
  0x1d   : > { %s479_s7 = sadd.s32 134217728, %s478_s6  ;;  %s480_s15 = sshll.u32 %s717_s20, 6 }
  0x1e   : > { %506 = dma.general (%p706_p4), %s124_s26, 2048, %s138_s29, %s115_s8, %s652_s9, [#allocation7], %s479_s7, 0  }
  0x1f   : > { %s745_s23 = scalar_lea.hbm %s889_s1, %s497_s22  ;;  %s164_s24 = scalar_lea.vmem [#allocation4], %s480_s15 }
  0x20   : > { %s171_s25 = sshll.u32 %s164_s24, 4  ;;  %s161_s27 = scalar_lea.sflag [#allocation5], %s717_s20  ;;  %s747_s25 = int_to_ptr.vmem [resolvable:$true] %s171_s25 }
  0x21   : > { %s582_s28 = scalar_lea.hbm %s745_s23, 1024  ;;  %s586_s30 = scalar_lea.hbm %s889_s1, 2048 }
  0x22   : > { %p583_p8 = scmp.ne.s32.totalorder %s745_s23, %s582_s28  ;;  %p587_p11 = scmp.lt.s32.totalorder %s745_s23, %s889_s1 }
  0x23   : > { %p588_p12 = scmp.lt.s32.totalorder %s586_s30, %s582_s28 }
  0x24   : > { %p584_p9 = pnand %p583_p8, %p706_p4 }
  0x25   : > { %p589_p13 = por %p588_p12, %p587_p11 }
  0x26   : > { %p585_p10 = pneg %p584_p9 }
  0x28   : > { %p590_p0 = pnand %p589_p13, %p585_p10 }
  0x2a   : > { %593 = shalt.err (!%p590_p0)
}
  0x2b   : > { %s594_s4 = scalar_lea.vmem %s747_s25, 1024  ;;  %s653_s5 = smov [#allocation4]  }
  0x2c   : > { %p595_p1 = scmp.ne.s32.totalorder %s747_s25, %s594_s4  ;;  %s598_s6 = sshll.u32 %s653_s5, 4  ;;  %s599_s6 = int_to_ptr.vmem [resolvable:$false] %s598_s6 }
  0x2d   : > { %s600_s7 = scalar_lea.vmem %s599_s6, 2048  ;;  %p601_p5 = scmp.lt.s32.totalorder %s747_s25, %s599_s6 }
  0x2e   : > { %p596_p2 = pnand %p595_p1, %p706_p4  ;;  %p602_p7 = scmp.lt.s32.totalorder %s600_s7, %s594_s4 }
  0x30   : > { %p597_p3 = pneg %p596_p2  ;;  %p603_p8 = por %p602_p7, %p601_p5 }
  0x32   : > { %p604_p9 = pnand %p603_p8, %p597_p3 }
  0x34   : > { %607 = shalt.err (!%p604_p9)
}
  0x35   : > { %s654_s8 = smov 128   ;;  %s655_s9 = smov 8  }
  0x36   : > { %507 = dma.hbm_to_vmem [thread:$0]  (%p706_p4), %s745_s23, 1024, %s747_s25, %s161_s27, %s654_s8, %s654_s8, %s655_s9  }
  0x37 PF: > { %p483_p10 = scmp.ge.s32.totalorder %s646_s12, 1  ;;  %p179_p11 = scmp.lt.s32.totalorder %s646_s12, 3 }
  0x39   : > { %p180_p12 = pnand %p483_p10, %p179_p11 }
  0x3a   : > { %s185_s15 = sand.u32 (!%p180_p12), 1, %s638_s10  }
  0x3b   : > { %183 = sbr.rel (%p180_p12) target bundleno = 138 (0x8a), region = 28  ;;  %s484_s16 = sshll.u32 (!%p180_p12), %s185_s15, 7 }
  0x3c   : > { %s186_s21 = scalar_lea.sflag (!%p180_p12), [#allocation3], %s185_s15  ;;  %s189_s24 = scalar_lea.vmem (!%p180_p12), [#allocation2], %s484_s16 }
  0x40   : > { %625 = dma.done.wait (%p711_p6), %s186_s21, 2048  }
  0x41   : > { %627 = vsyncadd (%p711_p6), %s186_s21, 4294965248  ;;  %s485_s18 = sshll.u32 %s185_s15, 6  ;;  %s195_s20 = scalar_lea.sflag [#allocation5], %s185_s15 }
  0x42   : > { %s779_s23 = scalar_lea.vmem [#allocation4], %s485_s18 }
  0x43   : > { %629 = dma.done.wait (%p711_p6), %s195_s20, 1024  }
  0x44   : > { %631 = vsyncadd (%p711_p6), %s195_s20, 4294966272  ;;  %v229_v0 = vld [vmem:[%s189_s24] sm:$0xff]  ;;  %v230_v1 = vld [vmem:[%s189_s24 + $0x8] sm:$0xff]  ;;  %v656_v36 = vmov 0.0   ;;  %p225_p4 = scmp.lt.s32.totalorder %s691_s13, 1 }
  0x45   : > { %v231_v2 = vld [vmem:[%s189_s24 + $0x10] sm:$0xff]  ;;  %v232_v3 = vld [vmem:[%s189_s24 + $0x18] sm:$0xff]  ;;  %v233_v4 = vld [vmem:[%s189_s24 + $0x20] sm:$0xff] }
  0x46   : > { %v234_v5 = vld [vmem:[%s189_s24 + $0x28] sm:$0xff]  ;;  %v235_v6 = vld [vmem:[%s189_s24 + $0x30] sm:$0xff]  ;;  %v236_v7 = vld [vmem:[%s189_s24 + $0x38] sm:$0xff]  ;;  %s898_s13 = smov (!%p225_p4, %s691_s13), 1 }
  0x47   : > { %v487_v8 = vld [vmem:[%s189_s24 + $0x40] sm:$0xff]  ;;  %v488_v9 = vld [vmem:[%s189_s24 + $0x48] sm:$0xff]  ;;  %v489_v10 = vld [vmem:[%s189_s24 + $0x50] sm:$0xff]  ;;  %s486_s12 = sshll.u32 %s898_s13, 2 }
  0x48   : > { %v490_v11 = vld [vmem:[%s189_s24 + $0x58] sm:$0xff]  ;;  %v246_v12 = vsub.f32 %v229_v0, %v487_v8  ;;  %v491_v13 = vld [vmem:[%s189_s24 + $0x60] sm:$0xff]  ;;  %v492_v14 = vld [vmem:[%s189_s24 + $0x68] sm:$0xff]  ;;  %v247_v16 = vsub.f32 %v230_v1, %v488_v9  ;;  %v248_v17 = vsub.f32 %v231_v2, %v489_v10  ;;  %s848_s25 = scalar_lea.vmem %s890_s2, %s486_s12 }
  0x49   : > { %v493_v15 = vld [vmem:[%s189_s24 + $0x70] sm:$0xff]  ;;  %v249_v18 = vsub.f32 %v232_v3, %v490_v11  ;;  %v494_v19 = vld [vmem:[%s189_s24 + $0x78] sm:$0xff]  ;;  %v250_v20 = vsub.f32 %v233_v4, %v491_v13  ;;  %v251_v21 = vsub.f32 %v234_v5, %v492_v14  ;;  %v786_v32 = vld [vmem:[%s779_s23] sm:$0xff] }
  0x4a   : > { %v252_v22 = vsub.f32 %v235_v6, %v493_v15  ;;  %v254_v23 = vmul.f32 1.442695, %v246_v12  ;;  %v253_v24 = vsub.f32 %v236_v7, %v494_v19  ;;  %v256_v25 = vmul.f32 1.442695, %v247_v16  ;;  %v789_v33 = vld [vmem:[%s779_s23 + $0x8] sm:$0xff]  ;;  %v792_v34 = vld [vmem:[%s779_s23 + $0x10] sm:$0xff] }
  0x4b   : > { %v258_v26 = vmul.f32 1.442695, %v248_v17  ;;  %v260_v27 = vmul.f32 1.442695, %v249_v18  ;;  %v262_v28 = vmul.f32 1.442695, %v250_v20 }
  0x4c   : > { %550 = vpow2.f32 %v254_v23  ;;  %v264_v29 = vmul.f32 1.442695, %v251_v21  ;;  %v266_v30 = vmul.f32 1.442695, %v252_v22  ;;  %v268_v31 = vmul.f32 1.442695, %v253_v24 }
  0x4d   : > { %552 = vpow2.f32 %v256_v25  ;;  %vm294_vm0 = vcmp.eq.s32.totalorder %v786_v32, 1  ;;  %vm295_vm1 = vcmp.eq.s32.totalorder %v789_v33, 1  ;;  %vm296_vm2 = vcmp.eq.s32.totalorder %v792_v34, 1  ;;  %v798_v35 = vld [vmem:[%s779_s23 + $0x18] sm:$0xff]  ;;  %v806_v39 = vld [vmem:[%s779_s23 + $0x20] sm:$0xff]  ;;  %v812_v42 = vld [vmem:[%s779_s23 + $0x28] sm:$0xff] }
  0x4e   : > { %554 = vpow2.f32 %v258_v26  ;;  %vm297_vm3 = vcmp.eq.s32.totalorder %v798_v35, 1  ;;  %v360_v37 = vsel %vm294_vm0, 1.0, %v656_v36  ;;  %v361_v38 = vsel %vm295_vm1, 1.0, %v656_v36  ;;  %v818_v45 = vld [vmem:[%s779_s23 + $0x30] sm:$0xff]  ;;  %v824_v51 = vld [vmem:[%s779_s23 + $0x38] sm:$0xff] }
  0x4f   : > { %556 = vpow2.f32 %v260_v27  ;;  %v362_v40 = vsel %vm296_vm2, 1.0, %v656_v36  ;;  %vm298_vm4 = vcmp.eq.s32.totalorder %v806_v39, 1  ;;  %v368_v41 = vadd.f32 %v361_v38, %v360_v37 }
  0x50   : > { %558 = vpow2.f32 %v262_v28  ;;  %v363_v43 = vsel %vm297_vm3, 1.0, %v656_v36  ;;  %vm299_vm5 = vcmp.eq.s32.totalorder %v812_v42, 1  ;;  %v364_v46 = vsel %vm298_vm4, 1.0, %v656_v36 }
  0x51   : > { %560 = vpow2.f32 %v264_v29  ;;  %v369_v44 = vadd.f32 %v368_v41, %v362_v40  ;;  %vm300_vm6 = vcmp.eq.s32.totalorder %v818_v45, 1  ;;  %v365_v52 = vsel %vm299_vm5, 1.0, %v656_v36 }
  0x52   : > { %562 = vpow2.f32 %v266_v30  ;;  %vm301_vm7 = vcmp.eq.s32.totalorder %v824_v51, 1  ;;  %v366_v58 = vsel %vm300_vm6, 1.0, %v656_v36  ;;  %vm302_vm8 = vcmp.gt.s32.totalorder %v786_v32, 0 }
  0x53   : > { %564 = vpow2.f32 %v268_v31  ;;  %v370_v48 = vadd.f32 %v369_v44, %v363_v43  ;;  %v367_v0 = vsel %vm301_vm7, 1.0, %v656_v36  ;;  %vm303_vm9 = vcmp.gt.s32.totalorder %v789_v33, 0 }
  0x54   : > { %vm304_vm10 = vcmp.gt.s32.totalorder %v792_v34, 0  ;;  %vm305_vm11 = vcmp.gt.s32.totalorder %v798_v35, 0  ;;  %vm306_vm12 = vcmp.gt.s32.totalorder %v806_v39, 0  ;;  %vm307_vm13 = vcmp.gt.s32.totalorder %v812_v42, 0 }
  0x55   : > { %v371_v55 = vadd.f32 %v370_v48, %v364_v46  ;;  %vm308_vm14 = vcmp.gt.s32.totalorder %v818_v45, 0  ;;  %vm309_vm15 = vcmp.gt.s32.totalorder %v824_v51, 0 }
  0x57   : > { %v372_v61 = vadd.f32 %v371_v55, %v365_v52 }
  0x59   : > { %v551_v47 = vpop.eup %550  ;;  %v373_v3 = vadd.f32 %v372_v61, %v366_v58 }
  0x5a   : > { %v553_v49 = vpop.eup %552  ;;  %v270_v50 = vadd.f32 1.0, %v551_v47 }
  0x5b   : > { %v555_v53 = vpop.eup %554  ;;  %v271_v54 = vadd.f32 1.0, %v553_v49  ;;  %v374_v7 = vadd.f32 %v373_v3, %v367_v0 }
  0x5c   : > { %v557_v56 = vpop.eup %556  ;;  %v272_v57 = vadd.f32 1.0, %v555_v53  ;;  %566 = vrcp.f32 %v270_v50 }
  0x5d   : > { %v559_v59 = vpop.eup %558  ;;  %v273_v60 = vadd.f32 1.0, %v557_v56  ;;  %568 = vrcp.f32 %v271_v54  ;;  %v375_v8 = vrot.slane %v374_v7, 4 }
  0x5e   : > { %v561_v62 = vpop.eup %560  ;;  %v274_v63 = vadd.f32 1.0, %v559_v59  ;;  %570 = vrcp.f32 %v272_v57 }
  0x5f   : > { %v563_v1 = vpop.eup %562  ;;  %v275_v2 = vadd.f32 1.0, %v561_v62  ;;  %572 = vrcp.f32 %v273_v60  ;;  %v376_v9 = vadd.f32 %v375_v8, %v374_v7 }
  0x60   : > { %v565_v4 = vpop.eup %564  ;;  %v276_v5 = vadd.f32 1.0, %v563_v1  ;;  %574 = vrcp.f32 %v274_v63 }
  0x61   : > { %v277_v6 = vadd.f32 1.0, %v565_v4  ;;  %576 = vrcp.f32 %v275_v2  ;;  %v377_v10 = vrot.slane %v376_v9, 2 }
  0x62   : > { %578 = vrcp.f32 %v276_v5 }
  0x63   : > { %580 = vrcp.f32 %v277_v6  ;;  %v378_v12 = vadd.f32 %v377_v10, %v376_v9 }
  0x65   : > { %v379_v20 = vrot.slane %v378_v12, 1 }
  0x67   : > { %v380_v30 = vadd.f32 %v379_v20, %v378_v12 }
  0x69   : > { %v567_v11 = vpop.eup %566  ;;  %383 = vst [vmem:[%s848_s25 + $0x2] sm:$0x1] %v380_v30 }
  0x6a   : > { %v569_v13 = vpop.eup %568  ;;  %v310_v14 = vsel %vm294_vm0, %v567_v11, 0.0  ;;  %v331_v15 = vsel %vm302_vm8, %v567_v11, 0.0 }
  0x6b   : > { %v571_v16 = vpop.eup %570  ;;  %v311_v17 = vsel %vm295_vm1, %v569_v13, 0.0  ;;  %v332_v18 = vsel %vm303_vm9, %v569_v13, 0.0  ;;  %v339_v19 = vmul.f32 %v331_v15, %v331_v15 }
  0x6c   : > { %v573_v21 = vpop.eup %572  ;;  %v312_v22 = vsel %vm296_vm2, %v571_v16, 0.0  ;;  %v318_v23 = vadd.f32 %v311_v17, %v310_v14  ;;  %v333_v24 = vsel %vm304_vm10, %v571_v16, 0.0  ;;  %v340_v25 = vmul.f32 %v332_v18, %v332_v18 }
  0x6d   : > { %v575_v26 = vpop.eup %574  ;;  %v313_v27 = vsel %vm297_vm3, %v573_v21, 0.0  ;;  %v334_v28 = vsel %vm305_vm11, %v573_v21, 0.0  ;;  %v341_v29 = vmul.f32 %v333_v24, %v333_v24 }
  0x6e   : > { %v577_v31 = vpop.eup %576  ;;  %v319_v32 = vadd.f32 %v318_v23, %v312_v22  ;;  %v335_v33 = vsel %vm306_vm12, %v575_v26, 0.0  ;;  %v314_v34 = vsel %vm298_vm4, %v575_v26, 0.0  ;;  %v342_v37 = vmul.f32 %v334_v28, %v334_v28 }
  0x6f   : > { %v579_v36 = vpop.eup %578  ;;  %v347_v38 = vadd.f32 %v340_v25, %v339_v19  ;;  %v336_v35 = vsel %vm307_vm13, %v577_v31, 0.0  ;;  %v315_v43 = vsel %vm299_vm5, %v577_v31, 0.0  ;;  %v343_v44 = vmul.f32 %v335_v33, %v335_v33 }
  0x70   : > { %v320_v40 = vadd.f32 %v319_v32, %v313_v27  ;;  %v581_v41 = vpop.eup %580  ;;  %v337_v39 = vsel %vm308_vm14, %v579_v36, 0.0  ;;  %v316_v48 = vsel %vm300_vm6, %v579_v36, 0.0  ;;  %v344_v49 = vmul.f32 %v336_v35, %v336_v35 }
  0x71   : > { %v348_v46 = vadd.f32 %v347_v38, %v341_v29  ;;  %v338_v53 = vsel %vm309_vm15, %v581_v41, 0.0  ;;  %v317_v54 = vsel %vm301_vm7, %v581_v41, 0.0  ;;  %v345_v55 = vmul.f32 %v337_v39, %v337_v39 }
  0x72   : > { %v321_v47 = vadd.f32 %v320_v40, %v314_v34  ;;  %v346_v57 = vmul.f32 %v338_v53, %v338_v53 }
  0x73   : > { %v349_v50 = vadd.f32 %v348_v46, %v342_v37 }
  0x74   : > { %v322_v52 = vadd.f32 %v321_v47, %v315_v43 }
  0x75   : > { %v350_v56 = vadd.f32 %v349_v50, %v343_v44 }
  0x76   : > { %v323_v42 = vadd.f32 %v322_v52, %v316_v48 }
  0x77   : > { %v351_v58 = vadd.f32 %v350_v56, %v344_v49 }
  0x78   : > { %v324_v59 = vadd.f32 %v323_v42, %v317_v54 }
  0x79   : > { %v352_v60 = vadd.f32 %v351_v58, %v345_v55 }
  0x7a   : > { %v325_v61 = vrot.slane %v324_v59, 4 }
  0x7b   : > { %v353_v62 = vadd.f32 %v352_v60, %v346_v57 }
  0x7c   : > { %v326_v45 = vadd.f32 %v325_v61, %v324_v59 }
  0x7d   : > { %v354_v63 = vrot.slane %v353_v62, 4 }
  0x7e   : > { %v327_v0 = vrot.slane %v326_v45, 2 }
  0x7f   : > { %v355_v1 = vadd.f32 %v354_v63, %v353_v62 }
  0x80   : > { %v328_v2 = vadd.f32 %v327_v0, %v326_v45 }
  0x81   : > { %v356_v3 = vrot.slane %v355_v1, 2 }
  0x82   : > { %v329_v4 = vrot.slane %v328_v2, 1 }
  0x83   : > { %v357_v51 = vadd.f32 %v356_v3, %v355_v1 }
  0x84   : > { %v330_v5 = vadd.f32 %v329_v4, %v328_v2 }
  0x85   : > { %v358_v6 = vrot.slane %v357_v51, 1 }
  0x86   : > { %381 = vst [vmem:[%s848_s25] sm:$0x1] %v330_v5 }
  0x87   : > { %v359_v7 = vadd.f32 %v358_v6, %v357_v51 }
  0x89   : > { %382 = vst [vmem:[%s848_s25 + $0x1] sm:$0x1] %v359_v7 }
  0x8a PF: > { %p15_p6 = scmp.ge.s32.totalorder %s694_s14, 4   ;;  %s893_s9 = smov %s638_s10 }
  0x8b   : > { %s894_s10 = smov %s642_s11  ;;  %s895_s11 = smov %s704_s17 }
  0x8c   : > { %s896_s12 = smov %s694_s14  ;;  %17 = sbr.rel (!%p15_p6) target bundleno = 5 (0x5), region = 87 }
  0x91   :  { %403 = vsyncpa [#allocation3], 1 }
  0x92   :  { %405 = vsyncpa [#allocation3 + $0x1], 1 }
  0x93   :  { %406 = vsyncpa [#allocation5], 1 }
  0x94   :  { %408 = vsyncpa [#allocation5 + $0x1], 1 }

</bundles_post_ra>
